<compile_context>
chip_gen: v6e
topology: v6e:2x2x1
jax: 0.10.0
libtpu: 0.0.40
codegen_flags: <defaults>
</compile_context>

<pallas_src>
import functools

import jax
import jax.numpy as jnp
from jax.experimental import pallas as pl
from jax.experimental.pallas import tpu as pltpu


# ----------------------------- Pallas kernel ------------------------------- #
def _temporal_block_kernel(x_ref, w1_ref, b1_ref, w2_ref, b2_ref, *rest,
                           Bn, L, K, dil, has_downsample):
    """Fused TemporalBlock for a block of Bn batch elements, channels-first (C, L).

    x_ref  : (Bn, C_in, L)      bf16
    w1_ref : (C_out, K*C_in)    bf16   folded taps (tap-major rows)
    b1_ref : (C_out, 1)         f32
    w2_ref : (C_out, K*C_out)   bf16
    b2_ref : (C_out, 1)         f32
    [wd_ref: (C_out, C_in) bf16, bd_ref: (C_out, 1) f32]   (only if downsample)
    o_ref  : (Bn, C_out, L)     f32
    slab1  : (K*C_in, L)  bf16  VMEM scratch (im2col slab, conv1)
    slab2  : (K*C_out, L) bf16  VMEM scratch (im2col slab, conv2)
    """
    if has_downsample:
        wd_ref, bd_ref, o_ref, slab1, slab2 = rest
    else:
        o_ref, slab1, slab2 = rest

    c_in = x_ref.shape[1]
    c_out = o_ref.shape[1]

    # Zero the causal left-pad sub-blocks of the im2col slabs once per grid step
    # (these columns are never overwritten by the data stores below).
    for k in range(K):
        shift = (K - 1 - k) * dil          # number of zero (past-boundary) columns
        if shift > 0:
            slab1[k * c_in:(k + 1) * c_in, 0:shift] = jnp.zeros(
                (c_in, shift), slab1.dtype)
            slab2[k * c_out:(k + 1) * c_out, 0:shift] = jnp.zeros(
                (c_out, shift), slab2.dtype)

    for b in range(Bn):
        x = x_ref[b]                        # (C_in, L) bf16

        # ---- conv1: im2col into slab1, single MXU contraction, bias + ReLU ----
        for k in range(K):
            shift = (K - 1 - k) * dil
            slab1[k * c_in:(k + 1) * c_in, shift:L] = x[:, 0:L - shift]
        h1 = jnp.dot(w1_ref[...], slab1[...],
                     preferred_element_type=jnp.float32)        # (C_out, L) f32
        h1 = jnp.maximum(h1 + b1_ref[...], 0.0)
        # dropout1: identity (eval semantics)

        # ---- conv2: causal im2col of h1, single MXU contraction, bias + ReLU ----
        h1_bf = h1.astype(slab2.dtype)
        for k in range(K):
            shift = (K - 1 - k) * dil
            slab2[k * c_out:(k + 1) * c_out, shift:L] = h1_bf[:, 0:L - shift]
        h2 = jnp.dot(w2_ref[...], slab2[...],
                     preferred_element_type=jnp.float32)        # (C_out, L) f32
        h2 = jnp.maximum(h2 + b2_ref[...], 0.0)
        # dropout2: identity (eval semantics)

        # ---- residual branch (1x1 conv downsample or identity) + final ReLU ----
        if has_downsample:
            res = jnp.dot(wd_ref[...], x,
                          preferred_element_type=jnp.float32) + bd_ref[...]
        else:
            res = x.astype(jnp.float32)     # C_in == C_out
        o_ref[b] = jnp.maximum(h2 + res, 0.0).astype(o_ref.dtype)


# ------------------------------ JAX wrapper -------------------------------- #
def temporal_block(x_ncl, w1, b1, w2, b2, wd, bd, *,
                   kernel_size, dilation, padding, stride=1):
    """x_ncl: (N, C_in, L) like PyTorch NCL; w1: (C_out, C_in, K); w2: (C_out, C_out, K);
    wd: (C_out, C_in) or None (identity residual); returns (N, C_out, L) f32."""
    N, C_in, L = x_ncl.shape
    C_out = w1.shape[0]
    K = kernel_size
    assert stride == 1, "TemporalBlock Pallas kernel assumes stride == 1"
    assert padding == (K - 1) * dilation, \
        "TCN requires chomp size == padding == (K-1)*dilation"

    has_downsample = wd is not None
    if not has_downsample:
        assert C_in == C_out

    # Fold taps: (C_out, C_in, K) -> (C_out, K, C_in) -> (C_out, K*C_in), tap-major rows.
    w1f = jnp.transpose(w1, (0, 2, 1)).reshape(C_out, K * C_in).astype(jnp.bfloat16)
    w2f = jnp.transpose(w2, (0, 2, 1)).reshape(C_out, K * C_out).astype(jnp.bfloat16)
    b1c = b1.reshape(C_out, 1).astype(jnp.float32)
    b2c = b2.reshape(C_out, 1).astype(jnp.float32)
    x_bf = x_ncl.astype(jnp.bfloat16)       # bf16 matmul operands, f32 accumulation

    # Process several batch elements per grid step (largest divisor of N <= 8).
    Bn = 1
    for d in range(1, min(N, 8) + 1):
        if N % d == 0:
            Bn = d

    inputs = [x_bf, w1f, b1c, w2f, b2c]
    in_specs = [
        pl.BlockSpec((Bn, C_in, L), lambda n: (n, 0, 0)),           # x (NCL, per batch block)
        pl.BlockSpec((C_out, K * C_in), lambda n: (0, 0)),          # w1 folded
        pl.BlockSpec((C_out, 1), lambda n: (0, 0)),                 # b1
        pl.BlockSpec((C_out, K * C_out), lambda n: (0, 0)),         # w2 folded
        pl.BlockSpec((C_out, 1), lambda n: (0, 0)),                 # b2
    ]
    if has_downsample:
        wdc = wd.astype(jnp.bfloat16)                               # (C_out, C_in)
        bdc = bd.reshape(C_out, 1).astype(jnp.float32)
        inputs += [wdc, bdc]
        in_specs += [pl.BlockSpec((C_out, C_in), lambda n: (0, 0)),
                     pl.BlockSpec((C_out, 1), lambda n: (0, 0))]

    kernel = functools.partial(_temporal_block_kernel, Bn=Bn, L=L, K=K,
                               dil=dilation, has_downsample=has_downsample)

    out = pl.pallas_call(
        kernel,
        out_shape=jax.ShapeDtypeStruct((N, C_out, L), jnp.float32),
        grid_spec=pltpu.PrefetchScalarGridSpec(
            num_scalar_prefetch=0,
            grid=(N // Bn,),
            in_specs=in_specs,
            out_specs=pl.BlockSpec((Bn, C_out, L), lambda n: (n, 0, 0)),
            scratch_shapes=[pltpu.VMEM((K * C_in, L), jnp.bfloat16),   # conv1 im2col slab
                            pltpu.VMEM((K * C_out, L), jnp.bfloat16)], # conv2 im2col slab
        ),
        compiler_params=pltpu.CompilerParams(dimension_semantics=("parallel",)),
    )(*inputs)

    return out   # already (N, C_out, L); no transpose needed


# --------------------------- pure-JAX reference ----------------------------- #
def _conv1d_causal_ref(x_nlc, w, b, dil, P):
    # x_nlc: (N, L, Ci), w: (Co, Ci, K), b: (Co,)
    K = w.shape[2]
    L = x_nlc.shape[1]
    xp = jnp.pad(x_nlc, ((0, 0), (P, 0), (0, 0)))
    out = jnp.zeros((x_nlc.shape[0], L, w.shape[0]), jnp.float32) + b[None, None, :]
    for k in range(K):
        out = out + jnp.einsum('nli,oi->nlo', xp[:, k * dil:k * dil + L, :], w[:, :, k])
    return out


def temporal_block_ref(x_ncl, w1, b1, w2, b2, wd, bd, *, dilation, padding):
    x = jnp.transpose(x_ncl, (0, 2, 1)).astype(jnp.float32)
    h1 = jnp.maximum(_conv1d_causal_ref(x, w1, b1, dilation, padding), 0.0)
    h2 = jnp.maximum(_conv1d_causal_ref(h1, w2, b2, dilation, padding), 0.0)
    res = jnp.einsum('nli,oi->nlo', x, wd) + bd[None, None, :]
    return jnp.transpose(jnp.maximum(h2 + res, 0.0), (0, 2, 1))


# --------------------------------- setup ------------------------------------ #
def weight_norm_weight(v, g):
    # PyTorch weight_norm(dim=0): w = g * v / ||v||, norm over (in_ch, k) per out-channel
    norm = jnp.sqrt(jnp.sum(v * v, axis=(1, 2), keepdims=True))
    return g * v / norm


if __name__ == "__main__":
    # TemporalBlock(n_inputs=4, n_outputs=8, kernel_size=3, stride=1,
    #               dilation=2, padding=(3-1)*2=4)  -> downsample present
    N, C_in, C_out, L = 2, 4, 8, 16
    K, stride, dilation = 3, 1, 2
    padding = (K - 1) * dilation

    key = jax.random.PRNGKey(0)
    keys = jax.random.split(key, 9)
    # weight_norm params (v ~ N(0, 0.01) per init_weights; g deterministic-ish)
    v1 = 0.01 * jax.random.normal(keys[0], (C_out, C_in, K), jnp.float32)
    g1 = 1.0 + 0.1 * jax.random.normal(keys[1], (C_out, 1, 1), jnp.float32)
    b1 = 0.1 * jax.random.normal(keys[2], (C_out,), jnp.float32)
    v2 = 0.01 * jax.random.normal(keys[3], (C_out, C_out, K), jnp.float32)
    g2 = 1.0 + 0.1 * jax.random.normal(keys[4], (C_out, 1, 1), jnp.float32)
    b2 = 0.1 * jax.random.normal(keys[5], (C_out,), jnp.float32)
    wd = 0.01 * jax.random.normal(keys[6], (C_out, C_in), jnp.float32)   # 1x1 downsample
    bd = 0.1 * jax.random.normal(keys[7], (C_out,), jnp.float32)
    x = jax.random.normal(keys[8], (N, C_in, L), jnp.float32)

    w1 = weight_norm_weight(v1, g1)
    w2 = weight_norm_weight(v2, g2)

    out = temporal_block(x, w1, b1, w2, b2, wd, bd,
                         kernel_size=K, dilation=dilation, padding=padding,
                         stride=stride)
    out = jax.block_until_ready(out)

    # Reference uses the same bf16-rounded matmul operands as the kernel (f32 math
    # everywhere else), so the comparison isolates kernel arithmetic; tolerance covers
    # the kernel's bf16 cast of the conv1->conv2 intermediate.
    def q(a):
        return a.astype(jnp.bfloat16).astype(jnp.float32)

    ref = temporal_block_ref(q(x), q(w1), b1, q(w2), b2, q(wd), bd,
                             dilation=dilation, padding=padding)
    assert out.shape == (N, C_out, L)
    assert jnp.allclose(out, ref, atol=2e-2, rtol=2e-2), "mismatch vs reference"
    print("KERNEL_OK")
</pallas_src>

<mosaic_0001>
module attributes {stable_mosaic.version = 11 : i64} {
  func.func @_temporal_block_kernel(%arg0: i32, %arg1: memref<2x4x16xbf16, #tpu.memory_space<vmem>>, %arg2: memref<8x12xbf16, #tpu.memory_space<vmem>>, %arg3: memref<8x1xf32, #tpu.memory_space<vmem>>, %arg4: memref<8x24xbf16, #tpu.memory_space<vmem>>, %arg5: memref<8x1xf32, #tpu.memory_space<vmem>>, %arg6: memref<8x4xbf16, #tpu.memory_space<vmem>>, %arg7: memref<8x1xf32, #tpu.memory_space<vmem>>, %arg8: memref<2x8x16xf32, #tpu.memory_space<vmem>>, %arg9: memref<12x16xbf16, #tpu.memory_space<vmem>>, %arg10: memref<24x16xbf16, #tpu.memory_space<vmem>>) attributes {dimension_semantics = [#tpu.dimension_semantics<parallel>], iteration_bounds = array<i64: 1>, scalar_prefetch = 0 : i64, scratch_operands = 2 : i64, tpu.core_type = #tpu.core_type<tc>, window_params = [{transform_indices = @transform_0, window_bounds = array<i64: 2, 4, 16>}, {pipeline_mode = #tpu.pipeline_mode<synchronous>, transform_indices = @transform_1, window_bounds = array<i64: 8, 12>}, {pipeline_mode = #tpu.pipeline_mode<synchronous>, transform_indices = @transform_2, window_bounds = array<i64: 8, 1>}, {pipeline_mode = #tpu.pipeline_mode<synchronous>, transform_indices = @transform_3, window_bounds = array<i64: 8, 24>}, {pipeline_mode = #tpu.pipeline_mode<synchronous>, transform_indices = @transform_4, window_bounds = array<i64: 8, 1>}, {pipeline_mode = #tpu.pipeline_mode<synchronous>, transform_indices = @transform_5, window_bounds = array<i64: 8, 4>}, {pipeline_mode = #tpu.pipeline_mode<synchronous>, transform_indices = @transform_6, window_bounds = array<i64: 8, 1>}, {transform_indices = @transform_7, window_bounds = array<i64: 2, 8, 16>}]} {
    %cst = arith.constant 0.000000e+00 : bf16
    %0 = vector.broadcast %cst : bf16 to vector<4x4xbf16>
    %c0 = arith.constant 0 : index
    %c0_0 = arith.constant 0 : index
    %1 = vector.load %arg9[%c0, %c0_0] : memref<12x16xbf16, #tpu.memory_space<vmem>>, vector<4x4xbf16>
    tpu.vector_store %arg9[%c0, %c0_0], %0 {strides = array<i32>} : memref<12x16xbf16, #tpu.memory_space<vmem>>, vector<4x4xbf16>,
    %cst_1 = arith.constant 0.000000e+00 : bf16
    %2 = vector.broadcast %cst_1 : bf16 to vector<8x4xbf16>
    %c0_2 = arith.constant 0 : index
    %c0_3 = arith.constant 0 : index
    %3 = vector.load %arg10[%c0_2, %c0_3] : memref<24x16xbf16, #tpu.memory_space<vmem>>, vector<8x4xbf16>
    tpu.vector_store %arg10[%c0_2, %c0_3], %2 {strides = array<i32>} : memref<24x16xbf16, #tpu.memory_space<vmem>>, vector<8x4xbf16>,
    %cst_4 = arith.constant 0.000000e+00 : bf16
    %4 = vector.broadcast %cst_4 : bf16 to vector<4x2xbf16>
    %c4 = arith.constant 4 : index
    %c0_5 = arith.constant 0 : index
    %5 = vector.load %arg9[%c4, %c0_5] : memref<12x16xbf16, #tpu.memory_space<vmem>>, vector<4x2xbf16>
    tpu.vector_store %arg9[%c4, %c0_5], %4 {strides = array<i32>} : memref<12x16xbf16, #tpu.memory_space<vmem>>, vector<4x2xbf16>,
    %cst_6 = arith.constant 0.000000e+00 : bf16
    %6 = vector.broadcast %cst_6 : bf16 to vector<8x2xbf16>
    %c8 = arith.constant 8 : index
    %c0_7 = arith.constant 0 : index
    %7 = vector.load %arg10[%c8, %c0_7] : memref<24x16xbf16, #tpu.memory_space<vmem>>, vector<8x2xbf16>
    tpu.vector_store %arg10[%c8, %c0_7], %6 {strides = array<i32>} : memref<24x16xbf16, #tpu.memory_space<vmem>>, vector<8x2xbf16>,
    %c0_8 = arith.constant 0 : index
    %c0_9 = arith.constant 0 : index
    %c0_10 = arith.constant 0 : index
    %8 = vector.load %arg1[%c0_8, %c0_9, %c0_10] : memref<2x4x16xbf16, #tpu.memory_space<vmem>>, vector<1x4x16xbf16>
    %9 = vector.shape_cast %8 : vector<1x4x16xbf16> to vector<4x16xbf16>
    %10 = vector.extract_strided_slice %9 {offsets = [0, 0], sizes = [4, 12], strides = [1, 1]} : vector<4x16xbf16> to vector<4x12xbf16>
    %c0_11 = arith.constant 0 : index
    %c4_12 = arith.constant 4 : index
    %11 = vector.load %arg9[%c0_11, %c4_12] : memref<12x16xbf16, #tpu.memory_space<vmem>>, vector<4x12xbf16>
    tpu.vector_store %arg9[%c0_11, %c4_12], %10 {strides = array<i32>} : memref<12x16xbf16, #tpu.memory_space<vmem>>, vector<4x12xbf16>,
    %12 = vector.extract_strided_slice %9 {offsets = [0, 0], sizes = [4, 14], strides = [1, 1]} : vector<4x16xbf16> to vector<4x14xbf16>
    %c4_13 = arith.constant 4 : index
    %c2 = arith.constant 2 : index
    %13 = vector.load %arg9[%c4_13, %c2] : memref<12x16xbf16, #tpu.memory_space<vmem>>, vector<4x14xbf16>
    tpu.vector_store %arg9[%c4_13, %c2], %12 {strides = array<i32>} : memref<12x16xbf16, #tpu.memory_space<vmem>>, vector<4x14xbf16>,
    %c8_14 = arith.constant 8 : index
    %c0_15 = arith.constant 0 : index
    %14 = vector.load %arg9[%c8_14, %c0_15] : memref<12x16xbf16, #tpu.memory_space<vmem>>, vector<4x16xbf16>
    tpu.vector_store %arg9[%c8_14, %c0_15], %9 {strides = array<i32>} : memref<12x16xbf16, #tpu.memory_space<vmem>>, vector<4x16xbf16>,
    %c0_16 = arith.constant 0 : index
    %c0_17 = arith.constant 0 : index
    %15 = vector.load %arg2[%c0_16, %c0_17] : memref<8x12xbf16, #tpu.memory_space<vmem>>, vector<8x12xbf16>
    %c0_18 = arith.constant 0 : index
    %c0_19 = arith.constant 0 : index
    %16 = vector.load %arg9[%c0_18, %c0_19] : memref<12x16xbf16, #tpu.memory_space<vmem>>, vector<12x16xbf16>
    %cst_20 = arith.constant dense<0.000000e+00> : vector<8x16xf32>
    %17 = tpu.matmul %15, %16, %cst_20 {dimension_numbers = #tpu.dot_dimension_numbers<[1], [0], [0], [1], [0, 0, 1, 1], [], []>} : vector<8x12xbf16>, vector<12x16xbf16>, vector<8x16xf32> -> vector<8x16xf32>
    %c0_21 = arith.constant 0 : index
    %c0_22 = arith.constant 0 : index
    %18 = vector.load %arg3[%c0_21, %c0_22] : memref<8x1xf32, #tpu.memory_space<vmem>>, vector<8x1xf32>
    %19 = vector.broadcast %18 : vector<8x1xf32> to vector<8x16xf32>
    %20 = arith.addf %17, %19 : vector<8x16xf32>
    %cst_23 = arith.constant 0.000000e+00 : f32
    %21 = vector.broadcast %cst_23 : f32 to vector<8x16xf32>
    %22 = arith.maximumf %20, %21 : vector<8x16xf32>
    %23 = arith.truncf %22 : vector<8x16xf32> to vector<8x16xbf16>
    %24 = vector.extract_strided_slice %23 {offsets = [0, 0], sizes = [8, 12], strides = [1, 1]} : vector<8x16xbf16> to vector<8x12xbf16>
    %c0_24 = arith.constant 0 : index
    %c4_25 = arith.constant 4 : index
    %25 = vector.load %arg10[%c0_24, %c4_25] : memref<24x16xbf16, #tpu.memory_space<vmem>>, vector<8x12xbf16>
    tpu.vector_store %arg10[%c0_24, %c4_25], %24 {strides = array<i32>} : memref<24x16xbf16, #tpu.memory_space<vmem>>, vector<8x12xbf16>,
    %26 = vector.extract_strided_slice %23 {offsets = [0, 0], sizes = [8, 14], strides = [1, 1]} : vector<8x16xbf16> to vector<8x14xbf16>
    %c8_26 = arith.constant 8 : index
    %c2_27 = arith.constant 2 : index
    %27 = vector.load %arg10[%c8_26, %c2_27] : memref<24x16xbf16, #tpu.memory_space<vmem>>, vector<8x14xbf16>
    tpu.vector_store %arg10[%c8_26, %c2_27], %26 {strides = array<i32>} : memref<24x16xbf16, #tpu.memory_space<vmem>>, vector<8x14xbf16>,
    %c16 = arith.constant 16 : index
    %c0_28 = arith.constant 0 : index
    %28 = vector.load %arg10[%c16, %c0_28] : memref<24x16xbf16, #tpu.memory_space<vmem>>, vector<8x16xbf16>
    tpu.vector_store %arg10[%c16, %c0_28], %23 {strides = array<i32>} : memref<24x16xbf16, #tpu.memory_space<vmem>>, vector<8x16xbf16>,
    %c0_29 = arith.constant 0 : index
    %c0_30 = arith.constant 0 : index
    %29 = vector.load %arg4[%c0_29, %c0_30] : memref<8x24xbf16, #tpu.memory_space<vmem>>, vector<8x24xbf16>
    %c0_31 = arith.constant 0 : index
    %c0_32 = arith.constant 0 : index
    %30 = vector.load %arg10[%c0_31, %c0_32] : memref<24x16xbf16, #tpu.memory_space<vmem>>, vector<24x16xbf16>
    %cst_33 = arith.constant dense<0.000000e+00> : vector<8x16xf32>
    %31 = tpu.matmul %29, %30, %cst_33 {dimension_numbers = #tpu.dot_dimension_numbers<[1], [0], [0], [1], [0, 0, 1, 1], [], []>} : vector<8x24xbf16>, vector<24x16xbf16>, vector<8x16xf32> -> vector<8x16xf32>
    %c0_34 = arith.constant 0 : index
    %c0_35 = arith.constant 0 : index
    %32 = vector.load %arg5[%c0_34, %c0_35] : memref<8x1xf32, #tpu.memory_space<vmem>>, vector<8x1xf32>
    %33 = vector.broadcast %32 : vector<8x1xf32> to vector<8x16xf32>
    %34 = arith.addf %31, %33 : vector<8x16xf32>
    %cst_36 = arith.constant 0.000000e+00 : f32
    %35 = vector.broadcast %cst_36 : f32 to vector<8x16xf32>
    %36 = arith.maximumf %34, %35 : vector<8x16xf32>
    %c0_37 = arith.constant 0 : index
    %c0_38 = arith.constant 0 : index
    %37 = vector.load %arg6[%c0_37, %c0_38] : memref<8x4xbf16, #tpu.memory_space<vmem>>, vector<8x4xbf16>
    %cst_39 = arith.constant dense<0.000000e+00> : vector<8x16xf32>
    %38 = tpu.matmul %37, %9, %cst_39 {dimension_numbers = #tpu.dot_dimension_numbers<[1], [0], [0], [1], [0, 0, 1, 1], [], []>} : vector<8x4xbf16>, vector<4x16xbf16>, vector<8x16xf32> -> vector<8x16xf32>
    %c0_40 = arith.constant 0 : index
    %c0_41 = arith.constant 0 : index
    %39 = vector.load %arg7[%c0_40, %c0_41] : memref<8x1xf32, #tpu.memory_space<vmem>>, vector<8x1xf32>
    %40 = vector.broadcast %39 : vector<8x1xf32> to vector<8x16xf32>
    %41 = arith.addf %38, %40 : vector<8x16xf32>
    %42 = arith.addf %36, %41 : vector<8x16xf32>
    %cst_42 = arith.constant 0.000000e+00 : f32
    %43 = vector.broadcast %cst_42 : f32 to vector<8x16xf32>
    %44 = arith.maximumf %42, %43 : vector<8x16xf32>
    %c0_43 = arith.constant 0 : index
    %c0_44 = arith.constant 0 : index
    %c0_45 = arith.constant 0 : index
    %45 = vector.load %arg8[%c0_43, %c0_44, %c0_45] : memref<2x8x16xf32, #tpu.memory_space<vmem>>, vector<1x8x16xf32>
    %46 = vector.shape_cast %45 : vector<1x8x16xf32> to vector<8x16xf32>
    %47 = vector.shape_cast %44 : vector<8x16xf32> to vector<1x8x16xf32>
    tpu.vector_store %arg8[%c0_43, %c0_44, %c0_45], %47 {strides = array<i32>} : memref<2x8x16xf32, #tpu.memory_space<vmem>>, vector<1x8x16xf32>,
    %c1 = arith.constant 1 : index
    %c0_46 = arith.constant 0 : index
    %c0_47 = arith.constant 0 : index
    %48 = vector.load %arg1[%c1, %c0_46, %c0_47] : memref<2x4x16xbf16, #tpu.memory_space<vmem>>, vector<1x4x16xbf16>
    %49 = vector.shape_cast %48 : vector<1x4x16xbf16> to vector<4x16xbf16>
    %50 = vector.extract_strided_slice %49 {offsets = [0, 0], sizes = [4, 12], strides = [1, 1]} : vector<4x16xbf16> to vector<4x12xbf16>
    %c0_48 = arith.constant 0 : index
    %c4_49 = arith.constant 4 : index
    %51 = vector.load %arg9[%c0_48, %c4_49] : memref<12x16xbf16, #tpu.memory_space<vmem>>, vector<4x12xbf16>
    tpu.vector_store %arg9[%c0_48, %c4_49], %50 {strides = array<i32>} : memref<12x16xbf16, #tpu.memory_space<vmem>>, vector<4x12xbf16>,
    %52 = vector.extract_strided_slice %49 {offsets = [0, 0], sizes = [4, 14], strides = [1, 1]} : vector<4x16xbf16> to vector<4x14xbf16>
    %c4_50 = arith.constant 4 : index
    %c2_51 = arith.constant 2 : index
    %53 = vector.load %arg9[%c4_50, %c2_51] : memref<12x16xbf16, #tpu.memory_space<vmem>>, vector<4x14xbf16>
    tpu.vector_store %arg9[%c4_50, %c2_51], %52 {strides = array<i32>} : memref<12x16xbf16, #tpu.memory_space<vmem>>, vector<4x14xbf16>,
    %c8_52 = arith.constant 8 : index
    %c0_53 = arith.constant 0 : index
    %54 = vector.load %arg9[%c8_52, %c0_53] : memref<12x16xbf16, #tpu.memory_space<vmem>>, vector<4x16xbf16>
    tpu.vector_store %arg9[%c8_52, %c0_53], %49 {strides = array<i32>} : memref<12x16xbf16, #tpu.memory_space<vmem>>, vector<4x16xbf16>,
    %c0_54 = arith.constant 0 : index
    %c0_55 = arith.constant 0 : index
    %55 = vector.load %arg2[%c0_54, %c0_55] : memref<8x12xbf16, #tpu.memory_space<vmem>>, vector<8x12xbf16>
    %c0_56 = arith.constant 0 : index
    %c0_57 = arith.constant 0 : index
    %56 = vector.load %arg9[%c0_56, %c0_57] : memref<12x16xbf16, #tpu.memory_space<vmem>>, vector<12x16xbf16>
    %cst_58 = arith.constant dense<0.000000e+00> : vector<8x16xf32>
    %57 = tpu.matmul %55, %56, %cst_58 {dimension_numbers = #tpu.dot_dimension_numbers<[1], [0], [0], [1], [0, 0, 1, 1], [], []>} : vector<8x12xbf16>, vector<12x16xbf16>, vector<8x16xf32> -> vector<8x16xf32>
    %c0_59 = arith.constant 0 : index
    %c0_60 = arith.constant 0 : index
    %58 = vector.load %arg3[%c0_59, %c0_60] : memref<8x1xf32, #tpu.memory_space<vmem>>, vector<8x1xf32>
    %59 = vector.broadcast %58 : vector<8x1xf32> to vector<8x16xf32>
    %60 = arith.addf %57, %59 : vector<8x16xf32>
    %cst_61 = arith.constant 0.000000e+00 : f32
    %61 = vector.broadcast %cst_61 : f32 to vector<8x16xf32>
    %62 = arith.maximumf %60, %61 : vector<8x16xf32>
    %63 = arith.truncf %62 : vector<8x16xf32> to vector<8x16xbf16>
    %64 = vector.extract_strided_slice %63 {offsets = [0, 0], sizes = [8, 12], strides = [1, 1]} : vector<8x16xbf16> to vector<8x12xbf16>
    %c0_62 = arith.constant 0 : index
    %c4_63 = arith.constant 4 : index
    %65 = vector.load %arg10[%c0_62, %c4_63] : memref<24x16xbf16, #tpu.memory_space<vmem>>, vector<8x12xbf16>
    tpu.vector_store %arg10[%c0_62, %c4_63], %64 {strides = array<i32>} : memref<24x16xbf16, #tpu.memory_space<vmem>>, vector<8x12xbf16>,
    %66 = vector.extract_strided_slice %63 {offsets = [0, 0], sizes = [8, 14], strides = [1, 1]} : vector<8x16xbf16> to vector<8x14xbf16>
    %c8_64 = arith.constant 8 : index
    %c2_65 = arith.constant 2 : index
    %67 = vector.load %arg10[%c8_64, %c2_65] : memref<24x16xbf16, #tpu.memory_space<vmem>>, vector<8x14xbf16>
    tpu.vector_store %arg10[%c8_64, %c2_65], %66 {strides = array<i32>} : memref<24x16xbf16, #tpu.memory_space<vmem>>, vector<8x14xbf16>,
    %c16_66 = arith.constant 16 : index
    %c0_67 = arith.constant 0 : index
    %68 = vector.load %arg10[%c16_66, %c0_67] : memref<24x16xbf16, #tpu.memory_space<vmem>>, vector<8x16xbf16>
    tpu.vector_store %arg10[%c16_66, %c0_67], %63 {strides = array<i32>} : memref<24x16xbf16, #tpu.memory_space<vmem>>, vector<8x16xbf16>,
    %c0_68 = arith.constant 0 : index
    %c0_69 = arith.constant 0 : index
    %69 = vector.load %arg4[%c0_68, %c0_69] : memref<8x24xbf16, #tpu.memory_space<vmem>>, vector<8x24xbf16>
    %c0_70 = arith.constant 0 : index
    %c0_71 = arith.constant 0 : index
    %70 = vector.load %arg10[%c0_70, %c0_71] : memref<24x16xbf16, #tpu.memory_space<vmem>>, vector<24x16xbf16>
    %cst_72 = arith.constant dense<0.000000e+00> : vector<8x16xf32>
    %71 = tpu.matmul %69, %70, %cst_72 {dimension_numbers = #tpu.dot_dimension_numbers<[1], [0], [0], [1], [0, 0, 1, 1], [], []>} : vector<8x24xbf16>, vector<24x16xbf16>, vector<8x16xf32> -> vector<8x16xf32>
    %c0_73 = arith.constant 0 : index
    %c0_74 = arith.constant 0 : index
    %72 = vector.load %arg5[%c0_73, %c0_74] : memref<8x1xf32, #tpu.memory_space<vmem>>, vector<8x1xf32>
    %73 = vector.broadcast %72 : vector<8x1xf32> to vector<8x16xf32>
    %74 = arith.addf %71, %73 : vector<8x16xf32>
    %cst_75 = arith.constant 0.000000e+00 : f32
    %75 = vector.broadcast %cst_75 : f32 to vector<8x16xf32>
    %76 = arith.maximumf %74, %75 : vector<8x16xf32>
    %c0_76 = arith.constant 0 : index
    %c0_77 = arith.constant 0 : index
    %77 = vector.load %arg6[%c0_76, %c0_77] : memref<8x4xbf16, #tpu.memory_space<vmem>>, vector<8x4xbf16>
    %cst_78 = arith.constant dense<0.000000e+00> : vector<8x16xf32>
    %78 = tpu.matmul %77, %49, %cst_78 {dimension_numbers = #tpu.dot_dimension_numbers<[1], [0], [0], [1], [0, 0, 1, 1], [], []>} : vector<8x4xbf16>, vector<4x16xbf16>, vector<8x16xf32> -> vector<8x16xf32>
    %c0_79 = arith.constant 0 : index
    %c0_80 = arith.constant 0 : index
    %79 = vector.load %arg7[%c0_79, %c0_80] : memref<8x1xf32, #tpu.memory_space<vmem>>, vector<8x1xf32>
    %80 = vector.broadcast %79 : vector<8x1xf32> to vector<8x16xf32>
    %81 = arith.addf %78, %80 : vector<8x16xf32>
    %82 = arith.addf %76, %81 : vector<8x16xf32>
    %cst_81 = arith.constant 0.000000e+00 : f32
    %83 = vector.broadcast %cst_81 : f32 to vector<8x16xf32>
    %84 = arith.maximumf %82, %83 : vector<8x16xf32>
    %c1_82 = arith.constant 1 : index
    %c0_83 = arith.constant 0 : index
    %c0_84 = arith.constant 0 : index
    %85 = vector.load %arg8[%c1_82, %c0_83, %c0_84] : memref<2x8x16xf32, #tpu.memory_space<vmem>>, vector<1x8x16xf32>
    %86 = vector.shape_cast %85 : vector<1x8x16xf32> to vector<8x16xf32>
    %87 = vector.shape_cast %84 : vector<8x16xf32> to vector<1x8x16xf32>
    tpu.vector_store %arg8[%c1_82, %c0_83, %c0_84], %87 {strides = array<i32>} : memref<2x8x16xf32, #tpu.memory_space<vmem>>, vector<1x8x16xf32>,
    return
  }
  func.func @transform_0(%arg0: i32) -> (i32, i32, i32) {
    %c0_i32 = arith.constant 0 : i32
    %c0_i32_0 = arith.constant 0 : i32
    %c0_i32_1 = arith.constant 0 : i32
    return %arg0, %c0_i32, %c0_i32_0 : i32, i32, i32
  }
  func.func @transform_1(%arg0: i32) -> (i32, i32) {
    %c0_i32 = arith.constant 0 : i32
    %c0_i32_0 = arith.constant 0 : i32
    %c0_i32_1 = arith.constant 0 : i32
    return %c0_i32, %c0_i32_0 : i32, i32
  }
  func.func @transform_2(%arg0: i32) -> (i32, i32) {
    %c0_i32 = arith.constant 0 : i32
    %c0_i32_0 = arith.constant 0 : i32
    %c0_i32_1 = arith.constant 0 : i32
    return %c0_i32, %c0_i32_0 : i32, i32
  }
  func.func @transform_3(%arg0: i32) -> (i32, i32) {
    %c0_i32 = arith.constant 0 : i32
    %c0_i32_0 = arith.constant 0 : i32
    %c0_i32_1 = arith.constant 0 : i32
    return %c0_i32, %c0_i32_0 : i32, i32
  }
  func.func @transform_4(%arg0: i32) -> (i32, i32) {
    %c0_i32 = arith.constant 0 : i32
    %c0_i32_0 = arith.constant 0 : i32
    %c0_i32_1 = arith.constant 0 : i32
    return %c0_i32, %c0_i32_0 : i32, i32
  }
  func.func @transform_5(%arg0: i32) -> (i32, i32) {
    %c0_i32 = arith.constant 0 : i32
    %c0_i32_0 = arith.constant 0 : i32
    %c0_i32_1 = arith.constant 0 : i32
    return %c0_i32, %c0_i32_0 : i32, i32
  }
  func.func @transform_6(%arg0: i32) -> (i32, i32) {
    %c0_i32 = arith.constant 0 : i32
    %c0_i32_0 = arith.constant 0 : i32
    %c0_i32_1 = arith.constant 0 : i32
    return %c0_i32, %c0_i32_0 : i32, i32
  }
  func.func @transform_7(%arg0: i32) -> (i32, i32, i32) {
    %c0_i32 = arith.constant 0 : i32
    %c0_i32_0 = arith.constant 0 : i32
    %c0_i32_1 = arith.constant 0 : i32
    return %arg0, %c0_i32, %c0_i32_0 : i32, i32, i32
  }
}

</mosaic_0001>

<bundles_post_ra>
// kernel: tpu_custom_call.1
= control target key start
LH: loop header
LB: loop body
LE: loop exit
PB: predicated region body
PF: predicated region fallthrough
CT: control target
= control target key end

     0   :  { %v41_v1 = vlaneseq  ;;  %vm63_vm0 = vcmask 123904   ;;  %v621_v2 = vmov 1983009808   ;;  %vm28_vm1 = vcmask 25600   ;;  %s774_s0 = inlined_call_operand.vmem [shape: bf16[2,4,16], index: 0, kind: input, shape index: {}]   ;;  %s775_s1 = inlined_call_operand.vmem [shape: bf16[8,12], index: 1, kind: input, shape index: {}]   ;;  %s776_s2 = inlined_call_operand.vmem [shape: f32[8,1], index: 2, kind: input, shape index: {}]   ;;  %s777_s3 = inlined_call_operand.vmem [shape: bf16[8,24], index: 3, kind: input, shape index: {}]   ;;  %s778_s4 = inlined_call_operand.vmem [shape: f32[8,1], index: 4, kind: input, shape index: {}]   ;;  %s779_s5 = inlined_call_operand.vmem [shape: bf16[8,4], index: 5, kind: input, shape index: {}]   ;;  %s780_s6 = inlined_call_operand.vmem [shape: f32[8,1], index: 6, kind: input, shape index: {}]   ;;  %s781_s7 = inlined_call_operand.hbm [shape: f32[2,8,16], index: 7, kind: output, shape index: {}]  }
   0x1   :  { %v673_v0 = vld [vmem:[%s774_s0] sm:$0x3]  ;;  %v39_v3 = vunpack.c.l.s4 %v621_v2 }
   0x2   :  { %64 = vst.msk [vmem:[#allocation2 + $0x4] sm:$0x3] %vm63_vm0, %v673_v0 }
   0x3   :  { %12 = vsyncpa [#allocation5], 0  ;;  %v42_v4 = vshrl.u32 %v41_v1, 7  ;;  %vm32_vm2 = vcmask 11266   ;;  %v40_v5 = vunpack.c.0.s8 %v39_v3  ;;  %v622_v6 = vmov 0   ;;  %s624_s26 = smov 4  }
   0x4   :  { %29 = vst.msk [vmem:[#allocation2] sm:$0x3] %vm28_vm1, %v622_v6  ;;  %591 = vset.pattern.permute.xlu1 %v622_v6  ;;  %592 = vset.pattern.permute.xlu0 %v622_v6  ;;  %v623_v7 = vmov 0.0   ;;  %v50_v9 = vcombine.low %v673_v0, %v673_v0  ;;  %vm625_vm3 = vmmov 0   ;;  %s626_s27 = smov 2   ;;  %v68_v12 = vld [vmem:[%s776_s2] sm:$0xff] }
   0x5   :  { %33 = vst.msk [vmem:[#allocation2] sm:$0xc] %vm32_vm2, %v622_v6  ;;  %542 = vmatprep.subr.bf16.mxu0 %v623_v7  ;;  %548 = vmatprep.subr.bf16.mxu1 %v623_v7  ;;  %v43_v8 = vsub.s32 %v40_v5, %v42_v4  ;;  %vm48_vm4 = vcmask 123936   ;;  %vm61_vm5 = vcmask 125970   ;;  %vm83_vm6 = vcmask 1045504   ;;  %v376_v57 = vld [vmem:[%s778_s4] sm:$0xff] }
   0x6   :  { %544 = vmatprep.mubr.msk.bf16.mxu0 %vm625_vm3, %v623_v7  ;;  %552 = vmatprep.mubr.msk.bf16.mxu1 %vm625_vm3, %v623_v7  ;;  %v696_v16 = vld [vmem:[%s774_s0 + $0x2] sm:$0x3]  ;;  %vm79_vm7 = vcmask 97280   ;;  %vm34_vm8 = vcmask 11264   ;;  %vm30_vm9 = vcmask 27648   ;;  %vm142_vm10 = vcmask 125952  }
   0x7   :  { %v44_v10 = vrot.slane %v673_v0, %v43_v8  ;;  %v57_v11 = vrot.slane %v50_v9, %v43_v8  ;;  %71 = vperm.xlu1 %591, %v68_v12   ;;  %v65_v18 = vld [vmem:[%s775_s1] sm:$0xf]  ;;  %35 = vst.msk [vmem:[#allocation3 + $0x4] sm:$0xf] %vm34_vm8, %v622_v6  ;;  %v285_v24 = vcombine.low %v696_v16, %v696_v16  ;;  %vm167_vm11 = vcmask 1043456  }
   0x8   :  { %31 = vst.msk [vmem:[#allocation3] sm:$0xf] %vm30_vm9, %v622_v6  ;;  %v280_v29 = vrot.slane %v696_v16, %v43_v8  ;;  %vm223_vm12 = vcmask 1041408   ;;  %v212_v33 = vld [vmem:[%s779_s5] sm:$0xf]  ;;  %vm219_vm13 = vcmask 31744  }
   0x9   :  { %45 = vrot.lane.b32.xlu0 %v44_v10, %s624_s26  ;;  %v292_v28 = vrot.slane %v285_v24, %v43_v8  ;;  %v225_v31 = vsel %vm223_vm12, %v673_v0, 0  ;;  %vm140_vm14 = vcmask 125968   ;;  %vm135_vm15 = vcmask 125984   ;;  %v144_v39 = vld [vmem:[%s777_s3] sm:$0xf] }
   0xa   :  { %v298_v42 = vld [vmem:[%s775_s1] sm:$0xf]  ;;  %v449_v45 = vsel %vm223_vm12, %v696_v16, 0  ;;  %vm269_vm1 = vcmask 130048  }
   0xb   :  { %v438_v51 = vld [vmem:[%s779_s5] sm:$0xf] }
   0xc   :  { %v213_v59 = vld [vmem:[%s780_s6] sm:$0xff] }
   0xd   :  { %58 = vrot.lane.b32.xlu0 %v57_v11, %s626_s27  ;;  %v372_v4 = vld [vmem:[%s777_s3] sm:$0xf]  ;;  %s627_s3 = smov [#allocation4]  }
   0xe   :  { %s500_s19 = sshll.u32 %s627_s3, 4  ;;  %s501_s19 = int_to_ptr.vmem [resolvable:$true] %s500_s19 }
   0xf   :  { %s599_s20 = scalar_lea.vmem %s501_s19, 256  ;;  %p604_p1 = scmp.lt.s32.totalorder %s501_s19, %s501_s19 }
  0x10   :  { %p600_p0 = scmp.ne.s32.totalorder %s501_s19, %s599_s20  ;;  %p605_p2 = scmp.lt.s32.totalorder %s599_s20, %s599_s20 }
  0x12   :  { %p606_p3 = por %p605_p2, %p604_p1 }
  0x14   :  { %p607_p4 = pnand %p606_p3, %p600_p0 }
  0x7b   :  { %v46_v13 = vpop.permute.xlu0 %45 }
  0x7c   :  { %49 = vst.msk [vmem:[#allocation2] sm:$0x3] %vm48_vm4, %v46_v13 }
  0x7f   :  { %v59_v14 = vpop.permute.xlu0 %58 }
  0x80   :  { %62 = vst.msk [vmem:[#allocation2] sm:$0xc] %vm61_vm5, %v59_v14 }
  0x82   :  { %v72_v19 = vpop.permute.xlu1 %71 }
  0x87   :  { %v593_v15 = vld [vmem:[#allocation2] sm:$0x3f]  }
  0x88   :  { %297 = vst.msk [vmem:[#allocation2 + $0x4] sm:$0x3] %vm63_vm0, %v696_v16  ;;  %v85_v17 = vsel %vm83_vm6, %v593_v15, 0  ;;  %vm163_vm0 = vcmask 195584  }
  0x89   :  { %543 = vmatpush3.bf16.msra.mxu0 %v85_v17 }
  0x8a   :  { %556 = vmatprep.subr.bf16.mxu0 %v623_v7 }
  0x8c   :  { %545 = vmatmul.mubr.msk.bf16.vlgmr.msra.gmra.mxu0 %vm79_vm7, %v65_v18 }
  0x8d   :  { %558 = vmatprep.mubr.msk.bf16.mxu0 %vm625_vm3, %v623_v7  ;;  %557 = vmatpush3.bf16.msra.mxu0 %v225_v31 }
  0x8e   :  { %568 = vmatprep.subr.bf16.mxu0 %v623_v7 }
  0x94   :  { %559 = vmatmul.mubr.msk.bf16.vlgmr.msra.gmra.mxu0 %vm219_vm13, %v212_v33 }
  0x95   :  { %572 = vmatprep.mubr.msk.bf16.mxu0 %vm625_vm3, %v623_v7 }
 0x14c   :  { %v121_v20 = vpop.f32.mrf.mxu0 }
 0x14d   :  { %v122_v21 = vadd.f32 %v121_v20, %v72_v19 }
 0x14e   :  { %v546_v22 = vpop.f32.mrf.mxu0 }
 0x14f   :  { %v127_v23 = vmax.f32 %v122_v21, 0.0 }
 0x150   :  { %v124_v25 = vpop.f32.mrf.mxu0 }
 0x151   :  { %v128_v26 = vpack.c.bf16 %v127_v23, %v127_v23 }
 0x152   :  { %v547_v27 = vpop.f32.mrf.mxu0 }
 0x153   :  { %143 = vst.msk [vmem:[#allocation3 + $0x8] sm:$0xf] %vm142_vm10, %v128_v26  ;;  %137 = vrot.lane.b32.xlu0 %v128_v26, %s626_s27  ;;  %132 = vrot.lane.b32.xlu1 %v128_v26, %s624_s26 }
 0x154   :  { %v261_v58 = vpop.f32.mrf.mxu0 }
 0x156   :  { %v560_v60 = vpop.f32.mrf.mxu0 }
 0x157   :  { %293 = vrot.lane.b32.xlu0 %v292_v28, %s626_s27  ;;  %281 = vrot.lane.b32.xlu1 %v280_v29, %s624_s26 }
 0x158   :  { %v264_v62 = vpop.f32.mrf.mxu0 }
 0x15a   :  { %v594_v30 = vld [vmem:[#allocation3 + $0x8] ss:$0 sps:$4 sm:$0xff]   ;;  %v561_v0 = vpop.f32.mrf.mxu0 }
 0x15b   :  { %304 = vperm.xlu1 %591, %v68_v12   ;;  %v169_v32 = vsel %vm167_vm11, %v594_v30, 0 }
 0x15c   :  { %549 = vmatpush3.bf16.msra.mxu1 %v169_v32 }
 0x15d   :  { %550 = vmatprep.subr.bf16.mxu1 %v623_v7 }
 0x1c5   :  { %v138_v34 = vpop.permute.xlu0 %137  ;;  %v133_v35 = vpop.permute.xlu1 %132 }
 0x1c6   :  { %141 = vst.msk [vmem:[#allocation3 + $0x4] sm:$0xf] %vm140_vm14, %v138_v34 }
 0x1c7   :  { %136 = vst.msk [vmem:[#allocation3] sm:$0xf] %vm135_vm15, %v133_v35 }
 0x1c9   :  { %v294_v36 = vpop.permute.xlu0 %293  ;;  %v282_v37 = vpop.permute.xlu1 %281 }
 0x1ca   :  { %296 = vst.msk [vmem:[#allocation2] sm:$0xc] %vm61_vm5, %v294_v36 }
 0x1cb   :  { %284 = vst.msk [vmem:[#allocation2] sm:$0x3] %vm48_vm4, %v282_v37 }
 0x1ce   :  { %v595_v38 = vld [vmem:[#allocation3] sm:$0xff]  }
 0x1cf   :  { %551 = vmatpush3.bf16.msra.mxu1 %v595_v38 }
 0x1d0   :  { %562 = vmatprep.subr.bf16.mxu1 %v623_v7 }
 0x1d2   :  { %v596_v40 = vld [vmem:[#allocation2] sm:$0x3f]   ;;  %553 = vmatmul.mubr.msk.bf16.vlgmr.msra.gmra.mxu1 %vm163_vm0, %v144_v39 }
 0x1d3   :  { %v316_v41 = vsel %vm83_vm6, %v596_v40, 0  ;;  %564 = vmatprep.mubr.msk.bf16.mxu1 %vm625_vm3, %v623_v7 }
 0x1d4   :  { %563 = vmatpush3.bf16.msra.mxu1 %v316_v41 }
 0x1d5   :  { %576 = vmatprep.subr.bf16.mxu1 %v623_v7 }
 0x1d6   :  { %v305_v48 = vpop.permute.xlu1 %304 }
 0x1da   :  { %565 = vmatmul.mubr.msk.bf16.vlgmr.msra.gmra.mxu1 %vm79_vm7, %v298_v42 }
 0x1db   :  { %578 = vmatprep.mubr.msk.bf16.mxu1 %vm625_vm3, %v623_v7  ;;  %577 = vmatpush3.bf16.msra.mxu1 %v449_v45 }
 0x1e2   :  { %579 = vmatmul.mubr.msk.bf16.vlgmr.msra.gmra.mxu1 %vm219_vm13, %v438_v51 }
 0x292   :  { %v205_v43 = vpop.f32.mrf.mxu1 }
 0x294   :  { %v554_v44 = vpop.f32.mrf.mxu1 }
 0x296   :  { %v208_v46 = vpop.f32.mrf.mxu1 }
 0x298   :  { %v555_v47 = vpop.f32.mrf.mxu1 }
 0x29a   :  { %v352_v49 = vpop.f32.mrf.mxu1 }
 0x29b   :  { %v353_v50 = vadd.f32 %v352_v49, %v305_v48 }
 0x29c   :  { %v566_v52 = vpop.f32.mrf.mxu1 }
 0x29d   :  { %v358_v53 = vmax.f32 %v353_v50, 0.0 }
 0x29e   :  { %v355_v54 = vpop.f32.mrf.mxu1 }
 0x29f   :  { %v359_v55 = vpack.c.bf16 %v358_v53, %v358_v53 }
 0x2a0   :  { %v567_v56 = vpop.f32.mrf.mxu1 }
 0x2a1   :  { %371 = vst.msk [vmem:[#allocation3 + $0x8] sm:$0xf] %vm142_vm10, %v359_v55  ;;  %367 = vrot.lane.b32.xlu1 %v359_v55, %s626_s27  ;;  %363 = vrot.lane.b32.xlu0 %v359_v55, %s624_s26 }
 0x2a2   :  { %v485_v13 = vpop.f32.mrf.mxu1 }
 0x2a4   :  { %v580_v14 = vpop.f32.mrf.mxu1 }
 0x2a5   :  { %379 = vperm.xlu1 %591, %v376_v57   ;;  %151 = vperm.xlu0 %592, %v376_v57  }
 0x2a6   :  { %v488_v15 = vpop.f32.mrf.mxu1 }
 0x2a8   :  { %v597_v61 = vld [vmem:[#allocation3 + $0x8] ss:$0 sps:$4 sm:$0xff]   ;;  %v581_v16 = vpop.f32.mrf.mxu1 }
 0x2a9   :  { %216 = vperm.xlu1 %591, %v213_v59   ;;  %442 = vperm.xlu0 %592, %v213_v59   ;;  %v395_v63 = vsel %vm167_vm11, %v597_v61, 0 }
 0x2aa   :  { %569 = vmatpush3.bf16.msra.mxu0 %v395_v63 }
 0x2ab   :  { %570 = vmatprep.subr.bf16.mxu0 %v623_v7 }
 0x313   :  { %v368_v1 = vpop.permute.xlu1 %367  ;;  %v364_v2 = vpop.permute.xlu0 %363 }
 0x314   :  { %370 = vst.msk [vmem:[#allocation3 + $0x4] sm:$0xf] %vm140_vm14, %v368_v1 }
 0x315   :  { %366 = vst.msk [vmem:[#allocation3] sm:$0xf] %vm135_vm15, %v364_v2 }
 0x31c   :  { %v598_v3 = vld [vmem:[#allocation3] sm:$0xff]  }
 0x31d   :  { %571 = vmatpush3.bf16.msra.mxu0 %v598_v3 }
 0x320   :  { %v380_v5 = vpop.permute.xlu1 %379  ;;  %v152_v6 = vpop.permute.xlu0 %151  ;;  %573 = vmatmul.mubr.msk.bf16.vlgmr.msra.gmra.mxu0 %vm163_vm0, %v372_v4 }
 0x321   :  { %v206_v8 = vadd.f32 %v205_v43, %v152_v6 }
 0x323   :  { %v211_v10 = vmax.f32 %v206_v8, 0.0 }
 0x324   :  { %v217_v9 = vpop.permute.xlu1 %216  ;;  %v443_v17 = vpop.permute.xlu0 %442 }
 0x325   :  { %v262_v7 = vadd.f32 %v261_v58, %v217_v9  ;;  %v486_v21 = vadd.f32 %v485_v13, %v443_v17 }
 0x327   :  { %v267_v11 = vadd.f32 %v262_v7, %v211_v10 }
 0x329   :  { %v268_v12 = vmax.f32 %v267_v11, 0.0 }
 0x32b   :  { %270 = vst.msk [vmem:[#allocation4] sm:$0xff] %vm269_vm1, %v268_v12 }
 0x3e0   :  { %v431_v18 = vpop.f32.mrf.mxu0 }
 0x3e1   :  { %v432_v19 = vadd.f32 %v431_v18, %v380_v5 }
 0x3e2   :  { %v574_v20 = vpop.f32.mrf.mxu0 }
 0x3e3   :  { %v437_v22 = vmax.f32 %v432_v19, 0.0 }
 0x3e4   :  { %v434_v23 = vpop.f32.mrf.mxu0 }
 0x3e5   :  { %v491_v24 = vadd.f32 %v486_v21, %v437_v22 }
 0x3e6   :  { %v575_v25 = vpop.f32.mrf.mxu0 }
 0x3e7   :  { %v492_v26 = vmax.f32 %v491_v24, 0.0 }
 0x3e9   :  { %494 = vst.msk [vmem:[#allocation4 + $0x8] sm:$0xff] %vm269_vm1, %v492_v26 }
 0x3ea   :  { %610 = shalt.err (!%p607_p4)
}
 0x3eb   :  { %s628_s21 = smov 128   ;;  %s629_s22 = smov 8  }
 0x3ec   :  { %506 = dma.vmem_to_hbm [thread:$0]  %s501_s19, 256, %s781_s7, [#allocation5], %s628_s21, %s628_s21, %s629_s22  }
 0x3ed   :  { %619 = dma.done.wait [#allocation5], 256  }
 0x3ee   :  { %620 = vsyncadd [#allocation5], 4294967040 }
 0x3ef   :  { %510 = vsyncpa [#allocation5], 1 }

</bundles_post_ra>
